<compile_context>
chip_gen: v7x
topology: tpu7x:2x2x1
jax: 0.10.0
libtpu: 0.0.40
codegen_flags: <defaults>
</compile_context>

<pallas_src>
import jax
import jax.numpy as jnp
from jax.experimental import pallas as pl
from jax.experimental.pallas import tpu as pltpu


def _round_up(x, m):
    return (x + m - 1) // m * m


# ---------------------------------------------------------------------------
# Kernels
# ---------------------------------------------------------------------------

def _mm_kernel_noacc(x_ref, w_ref, o_ref):
    # Single-K pass: one MXU call per (tm, tn) output tile, no accumulator.
    o_ref[...] = jnp.dot(
        x_ref[...], w_ref[...], preferred_element_type=jnp.float32
    ).astype(o_ref.dtype)


def _mm_kernel_acc_f32out(x_ref, w_ref, o_ref):
    # K-tiled, f32 output: accumulate directly into the (k-resident) output
    # block; no scratch buffer and no final copy.
    @pl.when(pl.program_id(2) == 0)
    def _():
        o_ref[...] = jnp.zeros_like(o_ref)

    o_ref[...] += jnp.dot(x_ref[...], w_ref[...], preferred_element_type=jnp.float32)


def _mm_kernel_acc(x_ref, w_ref, o_ref, acc_ref):
    # K-tiled, narrow output dtype: accumulate in f32 scratch, cast once.
    @pl.when(pl.program_id(2) == 0)
    def _():
        acc_ref[...] = jnp.zeros_like(acc_ref)

    acc_ref[...] += jnp.dot(x_ref[...], w_ref[...], preferred_element_type=jnp.float32)

    @pl.when(pl.program_id(2) == pl.num_programs(2) - 1)
    def _():
        o_ref[...] = acc_ref[...].astype(o_ref.dtype)


# ---------------------------------------------------------------------------
# Parameter prep (call once, outside the per-step path)
# ---------------------------------------------------------------------------

def prepare_sma_self_output_weight(weight):
    """One-time prep: PyTorch [Cout, Cin] -> [Cin, Cout] for native MXU rhs layout."""
    return jnp.asarray(weight).T


# ---------------------------------------------------------------------------
# Forward wrapper
# ---------------------------------------------------------------------------

def sma_self_output(hidden_states, weight_t, *, dropout_prob=0.0,
                    deterministic=True, interpret=False):
    """hidden_states: [B, S, Cin]; weight_t: [Cin, Cout] (pre-transposed once).

    Returns [B, S, Cout] = hidden_states @ weight_t  (Linear bias=False).
    Dropout is identity when deterministic (inference) or dropout_prob == 0.
    """
    if (not deterministic) and dropout_prob > 0.0:
        # TODO(synk): training-mode dropout mask via pltpu.prng_seed/prng_random_bits.
        raise NotImplementedError(
            "SMASelfOutput Pallas kernel: training-mode dropout not implemented")

    B, S, Cin = hidden_states.shape
    Cin_w, Cout = weight_t.shape
    assert Cin == Cin_w
    out_dtype = hidden_states.dtype

    M = B * S
    x = hidden_states.reshape(M, Cin)       # free: merges leading dims only

    x_b = x.dtype.itemsize
    w_b = weight_t.dtype.itemsize            # weight may differ from activations
    o_b = jnp.dtype(out_dtype).itemsize
    x_bytes = M * Cin * x_b
    w_bytes = Cin * Cout * w_b

    # dtype-aware sublane granularity: f32 -> 8, bf16 -> 16, i8/fp8 -> 32.
    sub = 8 * max(1, 4 // x_b)

    # ---- tile selection ------------------------------------------------------
    # N tile (lane dim of rhs and output): full extent when the weight is small
    # enough to stay VMEM-resident, or when Cout is not a multiple of 128 (the
    # only other legal width); otherwise 256-aligned for the v6e/v7x 256x256 MXU.
    if Cout % 128 != 0 or w_bytes <= (8 << 20):
        tn = Cout
    elif Cout % 512 == 0:
        tn = 512
    elif Cout % 256 == 0:
        tn = 256
    else:
        tn = 128

    # K tile: start with the full contraction (no accumulator round trip); the
    # VMEM-shrink loop below splits K first if the tiles don't fit.
    tk = Cin

    # M tile: largest sublane-aligned tile <= min(512, M).  Boundary M blocks
    # come from the cdiv grid, so the activations are never padded in HBM.
    tm = M if M <= sub else min(512, (M // sub) * sub)

    def _vmem_bytes(tm_, tn_, tk_):
        v = 2 * (tm_ * tk_ * x_b + tk_ * tn_ * w_b + tm_ * tn_ * o_b)  # double-buffered I/O
        if tk_ != Cin and out_dtype != jnp.float32:
            v += tm_ * tn_ * 4                                          # f32 acc scratch
        return v

    # ~36 MiB double-buffered tile budget: safe headroom on v7x (64 MiB VMEM/TC)
    # and well inside v5e/v6e.  Shrink K first (keeps the MXU fed), then N, and
    # only drop M as a last resort (small M tiles multiply grid-step overhead).
    BUDGET = 36 << 20
    while _vmem_bytes(tm, tn, tk) > BUDGET:
        if tk >= 512 and tk % 256 == 0:              # halved tk stays 128-aligned & divides Cin
            tk //= 2
        elif tn >= 512 and tn % 256 == 0:
            tn //= 2
        elif tm > 256 and tm % (2 * sub) == 0:
            tm //= 2
        elif tn >= 256 and tn % 256 == 0:
            tn //= 2
        elif tm > sub and tm % (2 * sub) == 0:
            tm //= 2
        else:
            break                                    # pathological shape; let Mosaic decide

    vmem_limit = int(min(max(_vmem_bytes(tm, tn, tk) + (4 << 20), 32 << 20), 48 << 20))
    cost = pl.CostEstimate(
        flops=2 * M * Cin * Cout,
        transcendentals=0,
        bytes_accessed=x_bytes + w_bytes + M * Cout * o_b,
    )

    m_blocks = pl.cdiv(M, tm)
    n_blocks = pl.cdiv(Cout, tn)

    if tk == Cin:
        # ---- no-accumulator path (full K in one MXU pass) --------------------
        if n_blocks == 1:
            grid = (m_blocks,)
            in_specs = [pl.BlockSpec((tm, Cin), lambda i: (i, 0)),
                        pl.BlockSpec((Cin, tn), lambda i: (0, 0))]   # weight stationary
            out_specs = pl.BlockSpec((tm, tn), lambda i: (i, 0))
            dim_sem = ("parallel",)
        elif x_bytes >= w_bytes:
            # Activations are the big operand: keep the x block stationary on the
            # outer axis and re-stream only the (smaller) weight on the inner axis.
            grid = (m_blocks, n_blocks)
            in_specs = [pl.BlockSpec((tm, Cin), lambda i, j: (i, 0)),
                        pl.BlockSpec((Cin, tn), lambda i, j: (0, j))]
            out_specs = pl.BlockSpec((tm, tn), lambda i, j: (i, j))
            dim_sem = ("parallel", "parallel")
        else:
            # Weight is the big operand: keep it stationary on the outer axis.
            grid = (n_blocks, m_blocks)
            in_specs = [pl.BlockSpec((tm, Cin), lambda j, i: (i, 0)),
                        pl.BlockSpec((Cin, tn), lambda j, i: (0, j))]
            out_specs = pl.BlockSpec((tm, tn), lambda j, i: (i, j))
            dim_sem = ("parallel", "parallel")
        kernel = _mm_kernel_noacc
        scratch = []
    else:
        # ---- K-tiled accumulator path ----------------------------------------
        k_blocks = Cin // tk                       # tk always divides Cin exactly
        grid = (m_blocks, n_blocks, k_blocks)
        in_specs = [pl.BlockSpec((tm, tk), lambda i, j, k: (i, k)),
                    pl.BlockSpec((tk, tn), lambda i, j, k: (k, j))]
        out_specs = pl.BlockSpec((tm, tn), lambda i, j, k: (i, j))
        dim_sem = ("parallel", "parallel", "arbitrary")
        if out_dtype == jnp.float32:
            kernel = _mm_kernel_acc_f32out         # accumulate straight into o_ref
            scratch = []
        else:
            kernel = _mm_kernel_acc
            scratch = [pltpu.VMEM((tm, tn), jnp.float32)]

    out = pl.pallas_call(
        kernel,
        out_shape=jax.ShapeDtypeStruct((M, Cout), out_dtype),
        grid_spec=pltpu.PrefetchScalarGridSpec(
            num_scalar_prefetch=0,
            grid=grid,
            in_specs=in_specs,
            out_specs=out_specs,
            scratch_shapes=scratch,
        ),
        compiler_params=pltpu.CompilerParams(
            dimension_semantics=dim_sem,
            vmem_limit_bytes=vmem_limit,
        ),
        cost_estimate=cost,
        interpret=interpret,
    )(x, weight_t)

    return out.reshape(B, S, Cout)


if __name__ == "__main__":
    key = jax.random.PRNGKey(0)
    k_x, k_w = jax.random.split(key)

    batch, seq = 2, 8
    in_channels, out_channels = 32, 32

    hidden_states = jax.random.normal(k_x, (batch, seq, in_channels), jnp.float32)
    # Deterministic Linear weight in native PyTorch layout [Cout, Cin].
    bound = 1.0 / (in_channels ** 0.5)
    weight = jax.random.uniform(
        k_w, (out_channels, in_channels), jnp.float32, minval=-bound, maxval=bound
    )

    # One-time parameter prep (transpose to [Cin, Cout]); hoisted out of the
    # per-forward path.
    weight_t = prepare_sma_self_output_weight(weight)

    out = sma_self_output(hidden_states, weight_t, dropout_prob=0.1, deterministic=True)
    jax.block_until_ready(out)

    # Reference in plain JAX (inference-mode dropout == identity).
    ref = jnp.einsum("bsi,oi->bso", hidden_states, weight)
    assert out.shape == (batch, seq, out_channels)
    assert jnp.allclose(out, ref, atol=1e-5, rtol=1e-5)

    print("KERNEL_OK")
</pallas_src>

<mosaic_0001>
module attributes {stable_mosaic.version = 11 : i64} {
  func.func @_mm_kernel_noacc(%arg0: i32, %arg1: memref<16x32xf32, #tpu.memory_space<vmem>>, %arg2: memref<32x32xf32, #tpu.memory_space<vmem>>, %arg3: memref<16x32xf32, #tpu.memory_space<vmem>>) attributes {dimension_semantics = [#tpu.dimension_semantics<parallel>], iteration_bounds = array<i64: 1>, scalar_prefetch = 0 : i64, scratch_operands = 0 : i64, tpu.core_type = #tpu.core_type<tc>, window_params = [{transform_indices = @transform_0, window_bounds = array<i64: 16, 32>}, {pipeline_mode = #tpu.pipeline_mode<synchronous>, transform_indices = @transform_1, window_bounds = array<i64: 32, 32>}, {transform_indices = @transform_2, window_bounds = array<i64: 16, 32>}]} {
    %c0 = arith.constant 0 : index
    %c0_0 = arith.constant 0 : index
    %0 = vector.load %arg1[%c0, %c0_0] : memref<16x32xf32, #tpu.memory_space<vmem>>, vector<16x32xf32>
    %c0_1 = arith.constant 0 : index
    %c0_2 = arith.constant 0 : index
    %1 = vector.load %arg2[%c0_1, %c0_2] : memref<32x32xf32, #tpu.memory_space<vmem>>, vector<32x32xf32>
    %cst = arith.constant dense<0.000000e+00> : vector<16x32xf32>
    %2 = tpu.matmul %0, %1, %cst {dimension_numbers = #tpu.dot_dimension_numbers<[1], [0], [0], [1], [0, 0, 1, 1], [], []>} : vector<16x32xf32>, vector<32x32xf32>, vector<16x32xf32> -> vector<16x32xf32>
    %c0_3 = arith.constant 0 : index
    %c0_4 = arith.constant 0 : index
    %3 = vector.load %arg3[%c0_3, %c0_4] : memref<16x32xf32, #tpu.memory_space<vmem>>, vector<16x32xf32>
    tpu.vector_store %arg3[%c0_3, %c0_4], %2 {strides = array<i32>} : memref<16x32xf32, #tpu.memory_space<vmem>>, vector<16x32xf32>,
    return
  }
  func.func @transform_0(%arg0: i32) -> (i32, i32) {
    %c0_i32 = arith.constant 0 : i32
    %c0_i32_0 = arith.constant 0 : i32
    return %arg0, %c0_i32 : i32, i32
  }
  func.func @transform_1(%arg0: i32) -> (i32, i32) {
    %c0_i32 = arith.constant 0 : i32
    %c0_i32_0 = arith.constant 0 : i32
    %c0_i32_1 = arith.constant 0 : i32
    return %c0_i32, %c0_i32_0 : i32, i32
  }
  func.func @transform_2(%arg0: i32) -> (i32, i32) {
    %c0_i32 = arith.constant 0 : i32
    %c0_i32_0 = arith.constant 0 : i32
    return %arg0, %c0_i32 : i32, i32
  }
}

</mosaic_0001>

<bundles_post_ra>
// kernel: tpu_custom_call.1
= control target key start
LH: loop header
LB: loop body
LE: loop exit
PB: predicated region body
PF: predicated region fallthrough
CT: control target
= control target key end

     0   :  { %7 = vsyncpa [#allocation3], 0  ;;  %s321_s0 = inlined_call_operand.hbm [shape: f32[16,32], index: 0, kind: input, shape index: {}]   ;;  %s322_s1 = inlined_call_operand.hbm [shape: f32[32,32], index: 1, kind: input, shape index: {}]   ;;  %s323_s2 = inlined_call_operand.hbm [shape: f32[16,32], index: 2, kind: output, shape index: {}]  }
   0x1   :  { %8 = vsyncpa [#allocation6], 0 }
   0x2   :  { %9 = vsyncpa [#allocation4], 0  ;;  %s252_s9 = smov [#allocation2]   ;;  %s180_s13 = scalar_lea.hbm %s321_s0, 256 }
   0x3   :  { %s15_s10 = sshll.u32 %s252_s9, 4  ;;  %p181_p0 = scmp.ne.s32.totalorder %s321_s0, %s180_s13  ;;  %s16_s10 = int_to_ptr.vmem [resolvable:$true] %s15_s10 }
   0x4   :  { %p184_p1 = scmp.lt.u32.totalorder %s180_s13, %s321_s0 }
   0x6   :  { %p186_p2 = pnand %p184_p1, %p181_p0 }
   0x8   :  { %189 = shalt.err (!%p186_p2)
}
   0x9   :  { %s190_s18 = scalar_lea.vmem %s16_s10, 256  ;;  %p195_p4 = scmp.lt.s32.totalorder %s16_s10, %s16_s10 }
   0xa   :  { %p191_p3 = scmp.ne.s32.totalorder %s16_s10, %s190_s18  ;;  %p196_p5 = scmp.lt.s32.totalorder %s190_s18, %s190_s18 }
   0xc   :  { %p197_p6 = por %p196_p5, %p195_p4 }
   0xe   :  { %p198_p7 = pnand %p197_p6, %p191_p3 }
  0x10   :  { %201 = shalt.err (!%p198_p7)
}
  0x11   :  { %s253_s19 = smov 128   ;;  %s254_s20 = smov 8  }
  0x12   :  { %21 = dma.hbm_to_vmem [thread:$0]  %s321_s0, 256, %s16_s10, [#allocation3], %s253_s19, %s253_s19, %s254_s20  }
  0x13   :  { %s255_s23 = smov [#allocation5]   ;;  %s202_s27 = scalar_lea.hbm %s322_s1, 512 }
  0x14   :  { %s27_s24 = sshll.u32 %s255_s23, 4  ;;  %p203_p8 = scmp.ne.s32.totalorder %s322_s1, %s202_s27  ;;  %s28_s24 = int_to_ptr.vmem [resolvable:$true] %s27_s24 }
  0x15   :  { %p206_p9 = scmp.lt.u32.totalorder %s202_s27, %s322_s1 }
  0x17   :  { %p208_p10 = pnand %p206_p9, %p203_p8 }
  0x19   :  { %211 = shalt.err (!%p208_p10)
}
  0x1a   :  { %s212_s4 = scalar_lea.vmem %s28_s24, 512  ;;  %p217_p12 = scmp.lt.s32.totalorder %s28_s24, %s28_s24 }
  0x1b   :  { %p213_p11 = scmp.ne.s32.totalorder %s28_s24, %s212_s4  ;;  %p218_p13 = scmp.lt.s32.totalorder %s212_s4, %s212_s4 }
  0x1d   :  { %p219_p0 = por %p218_p13, %p217_p12 }
  0x1f   :  { %p220_p1 = pnand %p219_p0, %p213_p11 }
  0x21   :  { %223 = shalt.err (!%p220_p1)
}
  0x22   :  { %33 = dma.hbm_to_vmem [thread:$0]  %s322_s1, 512, %s28_s24, [#allocation6], %s253_s19, %s253_s19, %s254_s20  }
  0x23   :  { %246 = dma.done.wait [#allocation3], 256  }
  0x24   :  { %247 = vsyncadd [#allocation3], 4294967040 }
  0x25   :  { %248 = dma.done.wait [#allocation6], 512  }
  0x26   :  { %249 = vsyncadd [#allocation6], 4294966784  ;;  %vm46_vm0 = vcmask 261120   ;;  %v42_v0 = vld [vmem:[#allocation5] sm:$0xff]  ;;  %v43_v1 = vld [vmem:[#allocation5 + $0x8] sm:$0xff]  ;;  %s256_s1 = smov [#allocation7]  }
  0x27   :  { %v44_v2 = vld [vmem:[#allocation5 + $0x10] sm:$0xff]  ;;  %v167_v3 = vpack.c.bf16 %v43_v1, %v42_v0  ;;  %v45_v4 = vld [vmem:[#allocation5 + $0x18] sm:$0xff]  ;;  %s135_s6 = sshll.u32 %s256_s1, 4  ;;  %s136_s6 = int_to_ptr.vmem [resolvable:$true] %s135_s6 }
  0x28   :  { %v40_v5 = vld [vmem:[#allocation2] sm:$0xff]  ;;  %v171_v6 = vpack.c.bf16 %v45_v4, %v44_v2  ;;  %v41_v7 = vld [vmem:[#allocation2 + $0x8] sm:$0xff]  ;;  %s224_s7 = scalar_lea.vmem %s136_s6, 256  ;;  %p229_p3 = scmp.lt.s32.totalorder %s136_s6, %s136_s6 }
  0x29   :  { %164 = vmatprep.mubr.msk.f32.mxu0 %vm46_vm0, %v40_v5  ;;  %168 = vmatprep.subr.bf16.mxu0 %v167_v3  ;;  %p225_p2 = scmp.ne.s32.totalorder %s136_s6, %s224_s7  ;;  %p230_p4 = scmp.lt.s32.totalorder %s224_s7, %s224_s7 }
  0x2a   :  { %170 = vmatpush3.bf16.msra.mxu0 %v167_v3 }
  0x2b   :  { %172 = vmatprep.subr.bf16.mxu0 %v171_v6  ;;  %p231_p5 = por %p230_p4, %p229_p3 }
  0x2d   :  { %p232_p6 = pnand %p231_p5, %p225_p2 }
  0x2e   :  { %174 = vmatpush3.bf16.msra.mxu0 %v171_v6 }
  0x31   :  { %165 = vmatmul.mubr.msk.f32.vlgmr.msra.gmra.mrb[0].mxu0 %vm46_vm0, %v41_v7 }
 0x104   :  { %v166_v8 = vpop.f32.mrb[0].mxu0 }
 0x105   :  { %129 = vst.msk [vmem:[#allocation7 + $0x8] sm:$0xff] %vm46_vm0, %v166_v8  ;;  %v119_v9 = vpop.f32.mrb[1].mxu0 }
 0x106   :  { %128 = vst.msk [vmem:[#allocation7] sm:$0xff] %vm46_vm0, %v119_v9 }
 0x107   :  { %235 = shalt.err (!%p232_p6)
}
 0x108   :  { %s236_s10 = scalar_lea.hbm %s323_s2, 256 }
 0x109   :  { %p237_p7 = scmp.ne.s32.totalorder %s323_s2, %s236_s10  ;;  %p240_p8 = scmp.lt.u32.totalorder %s236_s10, %s323_s2 }
 0x10b   :  { %p242_p9 = pnand %p240_p8, %p237_p7 }
 0x10d   :  { %245 = shalt.err (!%p242_p9)
}
 0x10e   :  { %141 = dma.vmem_to_hbm [thread:$0]  %s136_s6, 256, %s323_s2, [#allocation4], %s253_s19, %s253_s19, %s254_s20  }
 0x10f   :  { %250 = dma.done.wait [#allocation4], 256  }
 0x110   :  { %251 = vsyncadd [#allocation4], 4294967040 }
 0x111   :  { %145 = vsyncpa [#allocation3], 1 }
 0x112   :  { %146 = vsyncpa [#allocation6], 1 }
 0x113   :  { %147 = vsyncpa [#allocation4], 1 }

</bundles_post_ra>
